<compile_context>
chip_gen: v6e
topology: v6e:2x2x1
jax: 0.10.0
libtpu: 0.0.40
codegen_flags: <defaults>
</compile_context>

<pallas_src>
import math
import functools

import jax
import jax.numpy as jnp
from jax.experimental import pallas as pl
from jax.experimental.pallas import tpu as pltpu


def _round_up(v, m):
    return (v + m - 1) // m * m


def _arc_margin_kernel(x_ref, wt_ref, inv_wn_ref, inv_xn_ref, label_ref,
                       out_ref, *, s, cos_m, sin_m, th, mm, easy_margin,
                       ls_eps, out_features):
    x = x_ref[...]                       # (TB, D)  f32
    wt = wt_ref[...]                     # (D, TC)  f32  pre-transposed weight tile
    inv_wn = inv_wn_ref[...]             # (1, TC)  f32  1 / ||W_c||
    inv_xn = inv_xn_ref[...]             # (TB, 1)  f32  1 / ||x_b||
    lab = label_ref[...]                 # (TB, 1)  int32

    # raw dot on the MXU; normalize by rescaling the small (TB, TC) accumulator
    acc = jnp.dot(x, wt, preferred_element_type=jnp.float32)
    cosine = acc * inv_xn * inv_wn

    # clamp so sqrt never sees a negative (|cos| can exceed 1 by a few ULP)
    sine = jnp.sqrt(jnp.maximum(1.0 - cosine * cosine, 0.0))
    phi = cosine * cos_m - sine * sin_m
    if easy_margin:
        phi = jnp.where(cosine > 0.0, phi, cosine)
    else:
        phi = jnp.where(cosine > th, phi, cosine - mm)

    tb, tc = cosine.shape
    # global class index of each column in this tile
    col = pl.program_id(1) * tc + jax.lax.broadcasted_iota(jnp.int32, (tb, tc), 1)
    one_hot = jnp.where(col == lab, 1.0, 0.0)
    if ls_eps > 0:
        one_hot = (1.0 - ls_eps) * one_hot + ls_eps / out_features

    # folded blend + scale: (oh*phi + (1-oh)*cos)*s == s*cos + oh*s*(phi-cos)
    out_ref[...] = (s * cosine + one_hot * (s * (phi - cosine))).astype(out_ref.dtype)


def arc_margin_product(x, weight, label, *, s, m, easy_margin, ls_eps,
                       tb=128, tc=512):
    """JAX wrapper matching ArcMarginProduct.forward semantics."""
    B, D = x.shape
    C, D2 = weight.shape
    assert D == D2

    cos_m = math.cos(m)
    sin_m = math.sin(m)
    th = math.cos(math.pi - m)
    mm = math.sin(math.pi - m) * m

    x = x.astype(jnp.float32)
    w = weight.astype(jnp.float32)

    # One-time layout / prep (tiny plain-XLA ops):
    #   * transpose W to (D, C) for a lane-dense (TB,D)@(D,TC) contraction
    #   * inverse row norms of W -> (1, C), consumed per class tile
    #   * inverse row norms of x -> (B, 1), consumed per batch tile
    #     (1 / max(||.||, 1e-12), matching F.normalize eps)
    wt = w.T                                                          # (D, C)
    inv_wn = jax.lax.rsqrt(
        jnp.maximum(jnp.sum(w * w, axis=-1), 1e-24)).reshape(1, C)    # (1, C)
    inv_xn = jax.lax.rsqrt(
        jnp.maximum(jnp.sum(x * x, axis=-1), 1e-24)).reshape(B, 1)    # (B, 1)
    label2d = label.astype(jnp.int32).reshape(B, 1)

    # Tile sizes: TB multiple of 8, TC multiple of 128; cap so double-buffered
    # tiles comfortably fit v7x's smaller VMEM budget.
    TB = min(tb, _round_up(B, 8))
    TC = min(tc, _round_up(C, 128))
    vmem_budget = 24 * 1024 * 1024
    while TC > 128 and 2 * 4 * (D * TC + TB * TC + TB * D) > vmem_budget:
        TC //= 2

    Bp = _round_up(B, TB)
    Cp = _round_up(C, TC)

    # Zero-pad to tile multiples (padded rows/cols are sliced off at the end;
    # zero rows/columns give cosine == 0 there, which is harmless).
    xp = jnp.pad(x, ((0, Bp - B), (0, 0)))
    wtp = jnp.pad(wt, ((0, 0), (0, Cp - C)))
    inv_wnp = jnp.pad(inv_wn, ((0, 0), (0, Cp - C)))
    inv_xnp = jnp.pad(inv_xn, ((0, Bp - B), (0, 0)))
    labp = jnp.pad(label2d, ((0, Bp - B), (0, 0)))

    grid = (Bp // TB, Cp // TC)

    kernel = functools.partial(
        _arc_margin_kernel,
        s=float(s), cos_m=cos_m, sin_m=sin_m, th=th, mm=mm,
        easy_margin=bool(easy_margin), ls_eps=float(ls_eps),
        out_features=C,
    )

    cost = pl.CostEstimate(
        flops=2 * Bp * D * Cp,
        transcendentals=Bp * Cp,
        bytes_accessed=4 * (Bp * D + D * Cp + Cp + 2 * Bp + Bp * Cp),
    )

    out = pl.pallas_call(
        kernel,
        out_shape=jax.ShapeDtypeStruct((Bp, Cp), jnp.float32),
        grid_spec=pltpu.PrefetchScalarGridSpec(
            num_scalar_prefetch=0,
            grid=grid,
            in_specs=[
                pl.BlockSpec((TB, D), lambda i, j: (i, 0)),   # x rows
                pl.BlockSpec((D, TC), lambda i, j: (0, j)),   # W^T class tile
                pl.BlockSpec((1, TC), lambda i, j: (0, j)),   # 1/||W_c||
                pl.BlockSpec((TB, 1), lambda i, j: (i, 0)),   # 1/||x_b||
                pl.BlockSpec((TB, 1), lambda i, j: (i, 0)),   # labels
            ],
            out_specs=pl.BlockSpec((TB, TC), lambda i, j: (i, j)),
        ),
        compiler_params=pltpu.CompilerParams(
            dimension_semantics=("parallel", "parallel")),
        cost_estimate=cost,
    )(xp, wtp, inv_wnp, inv_xnp, labp)

    return out[:B, :C]


if __name__ == "__main__":
    # Module config (small, deterministic)
    in_features = 32
    out_features = 128
    batch = 8
    s = 30.0
    m = 0.50
    easy_margin = False
    ls_eps = 0.1

    key = jax.random.PRNGKey(0)
    k_w, k_x, k_l = jax.random.split(key, 3)

    # Xavier / Glorot uniform init for weight (out_features, in_features)
    bound = math.sqrt(6.0 / (in_features + out_features))
    weight = jax.random.uniform(
        k_w, (out_features, in_features), dtype=jnp.float32,
        minval=-bound, maxval=bound)

    x = jax.random.normal(k_x, (batch, in_features), dtype=jnp.float32)
    label = jax.random.randint(k_l, (batch,), 0, out_features, dtype=jnp.int32)

    out = arc_margin_product(
        x, weight, label, s=s, m=m, easy_margin=easy_margin, ls_eps=ls_eps)
    out = jax.block_until_ready(out)

    # Pure-JAX reference (faithful to the PyTorch forward)
    x_n = x / jnp.maximum(jnp.linalg.norm(x, axis=-1, keepdims=True), 1e-12)
    w_n = weight / jnp.maximum(
        jnp.linalg.norm(weight, axis=-1, keepdims=True), 1e-12)
    cos_ref = x_n @ w_n.T
    sin_ref = jnp.sqrt(jnp.maximum(1.0 - cos_ref ** 2, 0.0))
    phi_ref = cos_ref * math.cos(m) - sin_ref * math.sin(m)
    phi_ref = jnp.where(cos_ref > math.cos(math.pi - m), phi_ref,
                        cos_ref - math.sin(math.pi - m) * m)
    oh = jax.nn.one_hot(label, out_features, dtype=jnp.float32)
    oh = (1 - ls_eps) * oh + ls_eps / out_features
    ref = (oh * phi_ref + (1.0 - oh) * cos_ref) * s

    assert out.shape == (batch, out_features)
    assert jnp.allclose(out, ref, atol=1e-4, rtol=1e-4), "mismatch vs reference"

    print("KERNEL_OK")
</pallas_src>

<mosaic_0001>
module attributes {stable_mosaic.version = 11 : i64} {
  func.func @_arc_margin_kernel(%arg0: i32, %arg1: i32, %arg2: memref<8x32xf32, #tpu.memory_space<vmem>>, %arg3: memref<32x128xf32, #tpu.memory_space<vmem>>, %arg4: memref<1x128xf32, #tpu.memory_space<vmem>>, %arg5: memref<8x1xf32, #tpu.memory_space<vmem>>, %arg6: memref<8x1xi32, #tpu.memory_space<vmem>>, %arg7: memref<8x128xf32, #tpu.memory_space<vmem>>) attributes {dimension_semantics = [#tpu.dimension_semantics<parallel>, #tpu.dimension_semantics<parallel>], iteration_bounds = array<i64: 1, 1>, scalar_prefetch = 0 : i64, scratch_operands = 0 : i64, tpu.core_type = #tpu.core_type<tc>, window_params = [{transform_indices = @transform_0, window_bounds = array<i64: 8, 32>}, {transform_indices = @transform_1, window_bounds = array<i64: 32, 128>}, {transform_indices = @transform_2, window_bounds = array<i64: 1, 128>}, {transform_indices = @transform_3, window_bounds = array<i64: 8, 1>}, {transform_indices = @transform_4, window_bounds = array<i64: 8, 1>}, {transform_indices = @transform_5, window_bounds = array<i64: 8, 128>}]} {
    %c0 = arith.constant 0 : index
    %c0_0 = arith.constant 0 : index
    %0 = vector.load %arg2[%c0, %c0_0] : memref<8x32xf32, #tpu.memory_space<vmem>>, vector<8x32xf32>
    %c0_1 = arith.constant 0 : index
    %c0_2 = arith.constant 0 : index
    %1 = vector.load %arg3[%c0_1, %c0_2] : memref<32x128xf32, #tpu.memory_space<vmem>>, vector<32x128xf32>
    %c0_3 = arith.constant 0 : index
    %c0_4 = arith.constant 0 : index
    %2 = vector.load %arg4[%c0_3, %c0_4] : memref<1x128xf32, #tpu.memory_space<vmem>>, vector<1x128xf32>
    %c0_5 = arith.constant 0 : index
    %c0_6 = arith.constant 0 : index
    %3 = vector.load %arg5[%c0_5, %c0_6] : memref<8x1xf32, #tpu.memory_space<vmem>>, vector<8x1xf32>
    %c0_7 = arith.constant 0 : index
    %c0_8 = arith.constant 0 : index
    %4 = vector.load %arg6[%c0_7, %c0_8] : memref<8x1xi32, #tpu.memory_space<vmem>>, vector<8x1xi32>
    %cst = arith.constant dense<0.000000e+00> : vector<8x128xf32>
    %5 = tpu.matmul %0, %1, %cst {dimension_numbers = #tpu.dot_dimension_numbers<[1], [0], [0], [1], [0, 0, 1, 1], [], []>} : vector<8x32xf32>, vector<32x128xf32>, vector<8x128xf32> -> vector<8x128xf32>
    %6 = vector.broadcast %3 : vector<8x1xf32> to vector<8x128xf32>
    %7 = arith.mulf %5, %6 : vector<8x128xf32>
    %8 = vector.broadcast %2 : vector<1x128xf32> to vector<8x128xf32>
    %9 = arith.mulf %7, %8 : vector<8x128xf32>
    %10 = arith.mulf %9, %9 : vector<8x128xf32>
    %cst_9 = arith.constant 1.000000e+00 : f32
    %11 = vector.broadcast %cst_9 : f32 to vector<8x128xf32>
    %12 = arith.subf %11, %10 : vector<8x128xf32>
    %cst_10 = arith.constant 0.000000e+00 : f32
    %13 = vector.broadcast %cst_10 : f32 to vector<8x128xf32>
    %14 = arith.maximumf %12, %13 : vector<8x128xf32>
    %15 = math.sqrt %14 : vector<8x128xf32>
    %cst_11 = arith.constant 0.87758255 : f32
    %16 = vector.broadcast %cst_11 : f32 to vector<8x128xf32>
    %17 = arith.mulf %9, %16 : vector<8x128xf32>
    %cst_12 = arith.constant 0.47942555 : f32
    %18 = vector.broadcast %cst_12 : f32 to vector<8x128xf32>
    %19 = arith.mulf %15, %18 : vector<8x128xf32>
    %20 = arith.subf %17, %19 : vector<8x128xf32>
    %cst_13 = arith.constant -0.87758255 : f32
    %21 = vector.broadcast %cst_13 : f32 to vector<8x128xf32>
    %22 = arith.cmpf ogt, %9, %21 : vector<8x128xf32>
    %cst_14 = arith.constant 0.239712775 : f32
    %23 = vector.broadcast %cst_14 : f32 to vector<8x128xf32>
    %24 = arith.subf %9, %23 : vector<8x128xf32>
    %25 = arith.select %22, %20, %24 : vector<8x128xi1>, vector<8x128xf32>
    %c128_i32 = arith.constant 128 : i32
    %26 = arith.muli %arg1, %c128_i32 : i32
    %27 = tpu.iota {dimensions = array<i32: 1>} : vector<8x128xi32>
    %28 = vector.broadcast %26 : i32 to vector<8x128xi32>
    %29 = arith.addi %28, %27 : vector<8x128xi32>
    %30 = vector.broadcast %4 : vector<8x1xi32> to vector<8x128xi32>
    %31 = arith.cmpi eq, %29, %30 : vector<8x128xi32>
    %cst_15 = arith.constant 1.000000e+00 : f32
    %cst_16 = arith.constant 0.000000e+00 : f32
    %32 = vector.broadcast %cst_15 : f32 to vector<8x128xf32>
    %33 = vector.broadcast %cst_16 : f32 to vector<8x128xf32>
    %34 = arith.select %31, %32, %33 : vector<8x128xi1>, vector<8x128xf32>
    %cst_17 = arith.constant 0.899999976 : f32
    %35 = vector.broadcast %cst_17 : f32 to vector<8x128xf32>
    %36 = arith.mulf %35, %34 : vector<8x128xf32>
    %cst_18 = arith.constant 7.812500e-04 : f32
    %37 = vector.broadcast %cst_18 : f32 to vector<8x128xf32>
    %38 = arith.addf %36, %37 : vector<8x128xf32>
    %cst_19 = arith.constant 3.000000e+01 : f32
    %39 = vector.broadcast %cst_19 : f32 to vector<8x128xf32>
    %40 = arith.mulf %39, %9 : vector<8x128xf32>
    %41 = arith.subf %25, %9 : vector<8x128xf32>
    %cst_20 = arith.constant 3.000000e+01 : f32
    %42 = vector.broadcast %cst_20 : f32 to vector<8x128xf32>
    %43 = arith.mulf %42, %41 : vector<8x128xf32>
    %44 = arith.mulf %38, %43 : vector<8x128xf32>
    %45 = arith.addf %40, %44 : vector<8x128xf32>
    %c0_21 = arith.constant 0 : index
    %c0_22 = arith.constant 0 : index
    %46 = vector.load %arg7[%c0_21, %c0_22] : memref<8x128xf32, #tpu.memory_space<vmem>>, vector<8x128xf32>
    tpu.vector_store %arg7[%c0_21, %c0_22], %45 {strides = array<i32>} : memref<8x128xf32, #tpu.memory_space<vmem>>, vector<8x128xf32>,
    return
  }
  func.func @transform_0(%arg0: i32, %arg1: i32) -> (i32, i32) {
    %c0_i32 = arith.constant 0 : i32
    %c0_i32_0 = arith.constant 0 : i32
    return %arg0, %c0_i32 : i32, i32
  }
  func.func @transform_1(%arg0: i32, %arg1: i32) -> (i32, i32) {
    %c0_i32 = arith.constant 0 : i32
    %c0_i32_0 = arith.constant 0 : i32
    return %c0_i32, %arg1 : i32, i32
  }
  func.func @transform_2(%arg0: i32, %arg1: i32) -> (i32, i32) {
    %c0_i32 = arith.constant 0 : i32
    %c0_i32_0 = arith.constant 0 : i32
    return %c0_i32, %arg1 : i32, i32
  }
  func.func @transform_3(%arg0: i32, %arg1: i32) -> (i32, i32) {
    %c0_i32 = arith.constant 0 : i32
    %c0_i32_0 = arith.constant 0 : i32
    return %arg0, %c0_i32 : i32, i32
  }
  func.func @transform_4(%arg0: i32, %arg1: i32) -> (i32, i32) {
    %c0_i32 = arith.constant 0 : i32
    %c0_i32_0 = arith.constant 0 : i32
    return %arg0, %c0_i32 : i32, i32
  }
  func.func @transform_5(%arg0: i32, %arg1: i32) -> (i32, i32) {
    %c0_i32 = arith.constant 0 : i32
    return %arg0, %arg1 : i32, i32
  }
}

</mosaic_0001>

<bundles_post_ra>
// kernel: tpu_custom_call.1
= control target key start
LH: loop header
LB: loop body
LE: loop exit
PB: predicated region body
PF: predicated region fallthrough
CT: control target
= control target key end

     0   :  { %10 = vsyncpa [#allocation3], 0  ;;  %s307_s0 = inlined_call_operand.vmem [shape: f32[8,32], index: 0, kind: input, shape index: {}]   ;;  %s308_s1 = inlined_call_operand.hbm [shape: f32[32,128], index: 1, kind: input, shape index: {}]   ;;  %s309_s2 = inlined_call_operand.vmem [shape: f32[1,128], index: 2, kind: input, shape index: {}]   ;;  %s310_s3 = inlined_call_operand.vmem [shape: f32[8,1], index: 3, kind: input, shape index: {}]   ;;  %s311_s4 = inlined_call_operand.vmem [shape: s32[8,1], index: 4, kind: input, shape index: {}]   ;;  %s312_s5 = inlined_call_operand.hbm [shape: f32[8,128], index: 5, kind: output, shape index: {}]  }
   0x1   :  { %11 = vsyncpa [#allocation4], 0  ;;  %s252_s18 = smov [#allocation2]  }
   0x2   :  { %s19_s19 = sshll.u32 %s252_s18, 4  ;;  %s20_s19 = int_to_ptr.vmem [resolvable:$true] %s19_s19 }
   0x3   :  { %s216_s20 = scalar_lea.vmem %s20_s19, 512  ;;  %p221_p1 = scmp.lt.s32.totalorder %s20_s19, %s20_s19 }
   0x4   :  { %p217_p0 = scmp.ne.s32.totalorder %s20_s19, %s216_s20  ;;  %p222_p2 = scmp.lt.s32.totalorder %s216_s20, %s216_s20 }
   0x6   :  { %p223_p3 = por %p222_p2, %p221_p1 }
   0x8   :  { %p224_p4 = pnand %p223_p3, %p217_p0 }
   0xa   :  { %227 = shalt.err (!%p224_p4)
}
   0xb   :  { %s253_s21 = smov 128   ;;  %s254_s22 = smov 8  }
   0xc   :  { %25 = dma.hbm_to_vmem [thread:$0]  %s308_s1, 512, %s20_s19, [#allocation3], %s253_s21, %s253_s21, %s254_s22  }
   0xd   :  { %248 = dma.done.wait [#allocation3], 512  }
   0xe   :  { %249 = vsyncadd [#allocation3], 4294966784  ;;  %v255_v0 = vmov 0.0   ;;  %vm256_vm0 = vmmov 0   ;;  %v257_v1 = vmov 0   ;;  %v39_v2 = vld [vmem:[#allocation2 + $0x18] sm:$0xff]  ;;  %v147_v18 = vlaneseq }
   0xf   :  { %187 = vmatprep.subr.mxu0 %v255_v0  ;;  %195 = vmatprep.mubr.msk.f32.mxu0 %vm256_vm0, %v255_v0  ;;  %v38_v3 = vld [vmem:[#allocation2 + $0x10] sm:$0xff]  ;;  %v41_v4 = vld [vmem:[%s310_s3] sm:$0xff]  ;;  %v37_v5 = vld [vmem:[#allocation2 + $0x8] sm:$0xff]  ;;  %vm43_vm1 = vcmask 261120  }
  0x10   :  { %205 = vset.pattern.permute.xlu0 %v257_v1  ;;  %188 = vmatpush3.msra.mxu0 %v39_v2  ;;  %v42_v6 = vld [vmem:[%s311_s4] sm:$0xff]  ;;  %v148_v19 = vand.u32 127, %v147_v18 }
  0x11   :  { %189 = vmatprep.subr.mxu0 %v255_v0  ;;  %119 = vperm.xlu0 %205, %v41_v4   ;;  %v36_v7 = vld [vmem:[#allocation2] sm:$0xff] }
  0x12   :  { %190 = vmatpush3.msra.mxu0 %v38_v3  ;;  %v35_v8 = vld [vmem:[%s307_s0] sm:$0xff]  ;;  %s258_s0 = smov [#allocation5]  }
  0x13   :  { %191 = vmatprep.subr.mxu0 %v255_v0  ;;  %v180_v10 = vld [vmem:[%s309_s2] ss:$0 sm:$0xff]  ;;  %s170_s2 = sshll.u32 %s258_s0, 4  ;;  %s171_s2 = int_to_ptr.vmem [resolvable:$true] %s170_s2 }
  0x14   :  { %192 = vmatpush3.msra.mxu0 %v37_v5  ;;  %s228_s4 = scalar_lea.vmem %s171_s2, 128  ;;  %p233_p6 = scmp.lt.s32.totalorder %s171_s2, %s171_s2 }
  0x15   :  { %193 = vmatprep.subr.mxu0 %v255_v0  ;;  %152 = vperm.xlu0 %205, %v42_v6   ;;  %p229_p5 = scmp.ne.s32.totalorder %s171_s2, %s228_s4  ;;  %p234_p7 = scmp.lt.s32.totalorder %s228_s4, %s228_s4 }
  0x16   :  { %194 = vmatpush3.msra.mxu0 %v36_v7 }
  0x17   :  { %196 = vmatmul.mubr.msk.f32.vlgmr.msra.gmra.mxu0 %vm43_vm1, %v35_v8  ;;  %p235_p8 = por %p234_p7, %p233_p6 }
  0x19   :  { %p236_p9 = pnand %p235_p8, %p229_p5 }
  0x8c   :  { %v120_v9 = vpop.permute.xlu0 %119 }
  0x90   :  { %v153_v20 = vpop.permute.xlu0 %152 }
  0x91   :  { %vm154_vm2 = vcmp.eq.s32.totalorder %v148_v19, %v153_v20 }
  0x92   :  { %v155_v26 = vsel %vm154_vm2, 1.0, %v255_v0 }
  0x93   :  { %v156_v31 = vmul.f32 0.9, %v155_v26 }
  0x95   :  { %v157_v34 = vadd.f32 0.00078125, %v156_v31 }
  0xd7   :  { %v113_v11 = vpop.f32.mrf.mxu0 }
  0xd8   :  { %v122_v12 = vmul.f32 %v120_v9, %v113_v11 }
  0xd9   :  { %v197_v13 = vpop.f32.mrf.mxu0 }
  0xda   :  { %v129_v14 = vmul.f32 %v180_v10, %v122_v12 }
  0xdc   :  { %v130_v15 = vmul.f32 %v129_v14, %v129_v14  ;;  %v140_v27 = vmul.f32 0.87758255, %v129_v14  ;;  %v181_v30 = vadd.f32 -0.23971277, %v129_v14  ;;  %vm143_vm5 = vcmp.gt.f32.partialorder %v129_v14, -0.87758255 }
  0xdd   :  { %v158_v36 = vmul.f32 30.0, %v129_v14 }
  0xde   :  { %v131_v16 = vsub.f32 1.0, %v130_v15 }
  0xe0   :  { %v132_v17 = vmax.f32 %v131_v16, 0.0 }
  0xe2   :  { %206 = vrsqrt.f32 %v132_v17  ;;  %vm135_vm3 = vcmp.eq.f32.partialorder %v132_v17, inf  ;;  %v138_v23 = vand.u32 2147483648, %v132_v17  ;;  %vm137_vm4 = vcmp.eq.f32.partialorder %v132_v17, 0.0 }
  0xef   :  { %v207_v21 = vpop.eup %206 }
  0xf0   :  { %v134_v22 = vmul.f32 %v207_v21, %v132_v17 }
  0xf2   :  { %v136_v24 = vsel %vm135_vm3, %v132_v17, %v134_v22 }
  0xf3   :  { %v139_v25 = vsel %vm137_vm4, %v138_v23, %v136_v24 }
  0xf4   :  { %v141_v28 = vmul.f32 0.47942555, %v139_v25 }
  0xf6   :  { %v142_v29 = vsub.f32 %v140_v27, %v141_v28 }
  0xf8   :  { %v145_v32 = vsel %vm143_vm5, %v142_v29, %v181_v30 }
  0xf9   :  { %v159_v33 = vsub.f32 %v145_v32, %v129_v14 }
  0xfb   :  { %v160_v35 = vmul.f32 30.0, %v159_v33 }
  0xfd   :  { %v161_v37 = vmul.f32 %v160_v35, %v157_v34 }
  0xff   :  { %v162_v38 = vadd.f32 %v161_v37, %v158_v36 }
 0x101   :  { %163 = vst [vmem:[#allocation5] sm:$0xff] %v162_v38 }
 0x102   :  { %239 = shalt.err (!%p236_p9)
}
 0x103   :  { %173 = dma.vmem_to_hbm [thread:$0]  %s171_s2, 128, %s312_s5, [#allocation4]  }
 0x104   :  { %250 = dma.done.wait [#allocation4], 128  }
 0x105   :  { %251 = vsyncadd [#allocation4], 4294967168 }
 0x106   :  { %177 = vsyncpa [#allocation3], 1 }
 0x107   :  { %178 = vsyncpa [#allocation4], 1 }

</bundles_post_ra>
